<compile_context>
chip_gen: v5e
topology: v5e:2x2
jax: 0.10.0
libtpu: 0.0.40
codegen_flags: <defaults>
</compile_context>

<pallas_src>
import functools

import numpy as np
import jax
import jax.numpy as jnp
from jax.experimental import pallas as pl
from jax.experimental.pallas import tpu as pltpu


def _round_up(x, m):
    return (x + m - 1) // m * m


def _gaussian_kernel1d(ksize, sigma):
    half = (ksize - 1) * 0.5
    x = np.linspace(-half, half, ksize, dtype=np.float64)
    pdf = np.exp(-0.5 * (x / float(sigma)) ** 2)
    return pdf / pdf.sum()


def _is_symmetric(taps):
    n = len(taps)
    return all(abs(taps[i] - taps[n - 1 - i]) <= 1e-12 for i in range(n))


def _conv1d_const(x, taps, stride, out_len):
    """out[:, p] = sum_t taps[t] * x[:, p + t*stride]  (static shifted MACs).

    Symmetric taps are paired (add the two shifted slices first, multiply
    once) which roughly halves the multiply count -- the VALU is the binding
    unit for this f32 stencil on v5e/v6e (no f32 FMA)."""
    n_t = len(taps)
    acc = None

    def add(term):
        nonlocal acc
        acc = term if acc is None else acc + term

    if n_t > 1 and _is_symmetric(taps):
        for t in range(n_t // 2):
            lo, hi = t * stride, (n_t - 1 - t) * stride
            add(taps[t] * (x[:, lo:lo + out_len] + x[:, hi:hi + out_len]))
        if n_t % 2:
            c = (n_t // 2) * stride
            add(taps[n_t // 2] * x[:, c:c + out_len])
    else:
        for t in range(n_t):
            o = t * stride
            add(taps[t] * x[:, o:o + out_len])
    if acc is None:
        acc = jnp.zeros((x.shape[0], out_len), x.dtype)
    return acc


def _separable_kernel(x_ref, o_ref, *, kx, ky, wp, l_tmp, l_out):
    # x_ref: (tile_n, l_in) flattened reflect-padded rows (B*C on sublanes,
    # h*w on lanes).  Two fused 1-D passes; taps are compile-time constants.
    x = x_ref[...]
    tmp = _conv1d_const(x, kx, 1, l_tmp)       # horizontal 1-D pass
    out = _conv1d_const(tmp, ky, wp, l_out)    # vertical 1-D pass
    o_ref[...] = out.astype(o_ref.dtype)


def _dense_kernel(x_ref, o_ref, *, taps, wp, l_out):
    # Irregular (non rank-1) kernels: 2-D constant-tap loop, each tap is one
    # flat offset i*wp + j (zero taps skipped).
    x = x_ref[...]
    acc = None
    for i, row in enumerate(taps):
        for j, w in enumerate(row):
            if w == 0.0:
                continue
            off = i * wp + j
            term = w * x[:, off:off + l_out]
            acc = term if acc is None else acc + term
    if acc is None:
        acc = jnp.zeros((x.shape[0], l_out), x.dtype)
    o_ref[...] = acc.astype(o_ref.dtype)


def _pick_tile_n(n_pad, bytes_per_row, budget=12 << 20):
    """Largest sublane-aligned row tile that divides n_pad and keeps the
    double-buffered in+out block under ~12 MiB (fits v5e's 16 MiB scoped-VMEM
    default); halve once when that is free so v7x megacore gets >=2 steps."""
    cands = [t for t in range(8, n_pad + 1, 8) if n_pad % t == 0]
    fits = [t for t in cands if t * bytes_per_row <= budget]
    tile = max(fits) if fits else 8
    if tile == n_pad and n_pad >= 16:
        half = n_pad // 2
        if half % 8 == 0 and half * bytes_per_row <= budget:
            tile = half
    return tile


def _make_call(kernel_fn, l_in, l_out, tile_n, n_blocks, flops):
    n_pad = tile_n * n_blocks
    block_bytes = 4 * tile_n * (l_in + l_out)
    cost = pl.CostEstimate(
        flops=int(flops), transcendentals=0,
        bytes_accessed=int(4 * n_pad * (l_in + l_out)))
    vmem_limit = int(min(max(2 * block_bytes + (4 << 20), 32 << 20), 48 << 20))
    return pl.pallas_call(
        kernel_fn,
        out_shape=jax.ShapeDtypeStruct((n_pad, l_out), jnp.float32),
        grid_spec=pltpu.PrefetchScalarGridSpec(
            num_scalar_prefetch=0,
            grid=(n_blocks,),
            in_specs=[pl.BlockSpec((tile_n, l_in), lambda nb: (nb, 0))],
            out_specs=pl.BlockSpec((tile_n, l_out), lambda nb: (nb, 0)),
        ),
        compiler_params=pltpu.CompilerParams(
            dimension_semantics=("parallel",),
            vmem_limit_bytes=vmem_limit),
        cost_estimate=cost,
    )


@functools.lru_cache(maxsize=None)
def _build_separable_call(kx, ky, wp, l_in, l_tmp, l_out, tile_n, n_blocks):
    kernel_fn = functools.partial(
        _separable_kernel, kx=kx, ky=ky, wp=wp, l_tmp=l_tmp, l_out=l_out)
    flops = 2 * tile_n * n_blocks * (len(kx) * l_tmp + len(ky) * l_out)
    return _make_call(kernel_fn, l_in, l_out, tile_n, n_blocks, flops)


@functools.lru_cache(maxsize=None)
def _build_dense_call(taps, wp, l_in, l_out, tile_n, n_blocks):
    kernel_fn = functools.partial(_dense_kernel, taps=taps, wp=wp, l_out=l_out)
    kh, kw = len(taps), len(taps[0])
    flops = 2 * tile_n * n_blocks * kh * kw * l_out
    return _make_call(kernel_fn, l_in, l_out, tile_n, n_blocks, flops)


class GaussianChallengeIrregKernel:
    """JAX/Pallas port of Gaussian_challenge_irreg_kernel.forward."""

    def __init__(self, img, kernel_size, sigma, device=None, kernel=None,
                 task='learn_gaussian', time_frame=1):
        self.kernel_size = list(kernel_size)
        self.sigma = list(sigma)
        img = jnp.asarray(img)
        self.dtype = (img.dtype if jnp.issubdtype(img.dtype, jnp.floating)
                      else jnp.float32)
        self.shape = list(img.shape)

        if kernel is None:
            kx = _gaussian_kernel1d(self.kernel_size[0], self.sigma[0])
            ky = _gaussian_kernel1d(self.kernel_size[1], self.sigma[1])
            k2d = np.outer(ky, kx)                 # (kH, kW) = (ks[1], ks[0])
            self._separable = True
            self._kx = tuple(float(v) for v in kx)
            self._ky = tuple(float(v) for v in ky)
        else:
            k2d = np.asarray(kernel, dtype=np.float64)
            while k2d.ndim > 2:                    # accept pre-expanded weights
                k2d = k2d[0]
            # Rank-1 kernels (outer(ky, kx)) take the cheaper separable path.
            self._separable = False
            u, s, vt = np.linalg.svd(k2d)
            if s[0] > 0 and (s.size == 1 or s[1] <= 1e-7 * s[0]):
                self._separable = True
                self._ky = tuple(float(v) for v in (u[:, 0] * np.sqrt(s[0])))
                self._kx = tuple(float(v) for v in (vt[0, :] * np.sqrt(s[0])))

        self._kh, self._kw = int(k2d.shape[0]), int(k2d.shape[1])
        self._taps = tuple(tuple(float(v) for v in row) for row in k2d)
        self.kernel2d = jnp.asarray(k2d, dtype=jnp.float32)
        # Depthwise weight the PyTorch module stores/returns: (C, 1, kH, kW).
        c = self.shape[-3]
        self.kernel = jnp.broadcast_to(self.kernel2d,
                                       (c, 1, self._kh, self._kw))

    def forward(self, img, kernel=None):
        img = jnp.asarray(img)
        if not jnp.issubdtype(img.dtype, jnp.floating):
            img = img.astype(jnp.float32)
        img = img.astype(jnp.float32)
        need_squeeze = img.ndim < 4
        if need_squeeze:
            img = img[None]
        B, C, H, W = img.shape
        kh, kw = self._kh, self._kw
        # torch_pad padding = [ks0//2, ks0//2, ks1//2, ks1//2] = (l, r, t, b).
        pw = self.kernel_size[0] // 2
        ph = self.kernel_size[1] // 2

        # One reflect pad (jnp 'reflect' == torch 'reflect').
        # TODO(synk): fold the reflect halo into the kernel to drop this extra
        # HBM pass entirely (matters most for large, mem-bound images).
        img_p = jnp.pad(img, ((0, 0), (0, 0), (ph, ph), (pw, pw)),
                        mode="reflect")
        hp, wp = H + 2 * ph, W + 2 * pw
        h_out, w_out = hp - kh + 1, wp - kw + 1

        n = B * C
        n_pad = _round_up(max(n, 8), 8)
        # Flattened (h*w) spatial layout: the trailing (lane) dim is dense
        # without padding W up to 128, and a tap is a single flat offset.
        l_out = _round_up(h_out * wp, 128)          # lane-dense output slab
        l_tmp = l_out + (kh - 1) * wp               # horizontal-pass length
        l_in = _round_up(l_tmp + (kw - 1), 128)     # flat input length
        x = img_p.reshape(n, hp * wp)
        # Single constant pad: row (sublane) padding + flat tail slack.
        x = jnp.pad(x, ((0, n_pad - n), (0, l_in - hp * wp)))

        tile_n = _pick_tile_n(n_pad, 2 * 4 * (l_in + l_out))
        n_blocks = n_pad // tile_n
        # TODO(synk): very large single images (flat length >> VMEM) would need
        # an additional halo'd row-strip grid axis; not required at these sizes.
        if self._separable:
            call = _build_separable_call(self._kx, self._ky, wp, l_in, l_tmp,
                                         l_out, tile_n, n_blocks)
        else:
            call = _build_dense_call(self._taps, wp, l_in, l_out,
                                     tile_n, n_blocks)
        out = call(x)

        blurred = out[:n, :h_out * wp].reshape(B, C, h_out, wp)[..., :w_out]
        if need_squeeze:
            blurred = blurred[0]
        # TODO(synk): integer-input round+recast of _cast_squeeze_out omitted
        # (such inputs are promoted to float32, as in the module for floats).
        return blurred.astype(self.dtype), self.kernel


if __name__ == "__main__":
    key = jax.random.PRNGKey(0)
    x = jax.random.uniform(key, (2, 4, 16, 16), dtype=jnp.float32)
    B, C, H, W = x.shape

    # --- default (separable) Gaussian path -------------------------------
    kernel_size = [5, 5]
    sigma = [1.5, 1.5]
    mod = GaussianChallengeIrregKernel(x, kernel_size, sigma)
    blurred, kernel_dw = mod.forward(x)
    blurred = jax.block_until_ready(blurred)

    img_p = jnp.pad(
        x, ((0, 0), (0, 0),
            (kernel_size[1] // 2, kernel_size[1] // 2),
            (kernel_size[0] // 2, kernel_size[0] // 2)),
        mode="reflect")
    ref = jax.lax.conv_general_dilated(
        img_p, kernel_dw, window_strides=(1, 1), padding="VALID",
        dimension_numbers=("NCHW", "OIHW", "NCHW"), feature_group_count=C)
    assert blurred.shape == (2, 4, 16, 16), blurred.shape
    err = float(jnp.max(jnp.abs(blurred - ref)))
    assert err < 1e-4, err

    # --- irregular (non-separable) kernel path ----------------------------
    k_irr = np.array([[1.0, 2.0, 0.0],
                      [0.0, 1.0, 0.5],
                      [3.0, 0.0, 1.0]], dtype=np.float32) / 8.0
    mod2 = GaussianChallengeIrregKernel(x, [3, 3], [1.0, 1.0], kernel=k_irr)
    blurred2, kernel_dw2 = mod2.forward(x)
    blurred2 = jax.block_until_ready(blurred2)

    img_p2 = jnp.pad(x, ((0, 0), (0, 0), (1, 1), (1, 1)), mode="reflect")
    ref2 = jax.lax.conv_general_dilated(
        img_p2, kernel_dw2, window_strides=(1, 1), padding="VALID",
        dimension_numbers=("NCHW", "OIHW", "NCHW"), feature_group_count=C)
    assert blurred2.shape == (2, 4, 16, 16), blurred2.shape
    err2 = float(jnp.max(jnp.abs(blurred2 - ref2)))
    assert err2 < 1e-4, err2

    print("KERNEL_OK")
</pallas_src>

<mosaic_0001>
module attributes {stable_mosaic.version = 11 : i64} {
  func.func @_separable_kernel(%arg0: i32, %arg1: memref<8x512xf32, #tpu.memory_space<vmem>>, %arg2: memref<8x384xf32, #tpu.memory_space<vmem>>) attributes {dimension_semantics = [#tpu.dimension_semantics<parallel>], iteration_bounds = array<i64: 1>, scalar_prefetch = 0 : i64, scratch_operands = 0 : i64, tpu.core_type = #tpu.core_type<tc>, window_params = [{transform_indices = @transform_0, window_bounds = array<i64: 8, 512>}, {transform_indices = @transform_1, window_bounds = array<i64: 8, 384>}]} {
    %c0 = arith.constant 0 : index
    %c0_0 = arith.constant 0 : index
    %0 = vector.load %arg1[%c0, %c0_0] : memref<8x512xf32, #tpu.memory_space<vmem>>, vector<8x512xf32>
    %1 = vector.extract_strided_slice %0 {offsets = [0, 0], sizes = [8, 464], strides = [1, 1]} : vector<8x512xf32> to vector<8x464xf32>
    %2 = vector.extract_strided_slice %0 {offsets = [0, 4], sizes = [8, 464], strides = [1, 1]} : vector<8x512xf32> to vector<8x464xf32>
    %3 = arith.addf %1, %2 : vector<8x464xf32>
    %cst = arith.constant 0.120078385 : f32
    %4 = vector.broadcast %cst : f32 to vector<8x464xf32>
    %5 = arith.mulf %4, %3 : vector<8x464xf32>
    %6 = vector.extract_strided_slice %0 {offsets = [0, 1], sizes = [8, 464], strides = [1, 1]} : vector<8x512xf32> to vector<8x464xf32>
    %7 = vector.extract_strided_slice %0 {offsets = [0, 3], sizes = [8, 464], strides = [1, 1]} : vector<8x512xf32> to vector<8x464xf32>
    %8 = arith.addf %6, %7 : vector<8x464xf32>
    %cst_1 = arith.constant 0.233880758 : f32
    %9 = vector.broadcast %cst_1 : f32 to vector<8x464xf32>
    %10 = arith.mulf %9, %8 : vector<8x464xf32>
    %11 = arith.addf %5, %10 : vector<8x464xf32>
    %12 = vector.extract_strided_slice %0 {offsets = [0, 2], sizes = [8, 464], strides = [1, 1]} : vector<8x512xf32> to vector<8x464xf32>
    %cst_2 = arith.constant 0.292081714 : f32
    %13 = vector.broadcast %cst_2 : f32 to vector<8x464xf32>
    %14 = arith.mulf %13, %12 : vector<8x464xf32>
    %15 = arith.addf %11, %14 : vector<8x464xf32>
    %16 = vector.extract_strided_slice %15 {offsets = [0, 0], sizes = [8, 384], strides = [1, 1]} : vector<8x464xf32> to vector<8x384xf32>
    %17 = vector.extract_strided_slice %15 {offsets = [0, 80], sizes = [8, 384], strides = [1, 1]} : vector<8x464xf32> to vector<8x384xf32>
    %18 = arith.addf %16, %17 : vector<8x384xf32>
    %cst_3 = arith.constant 0.120078385 : f32
    %19 = vector.broadcast %cst_3 : f32 to vector<8x384xf32>
    %20 = arith.mulf %19, %18 : vector<8x384xf32>
    %21 = vector.extract_strided_slice %15 {offsets = [0, 20], sizes = [8, 384], strides = [1, 1]} : vector<8x464xf32> to vector<8x384xf32>
    %22 = vector.extract_strided_slice %15 {offsets = [0, 60], sizes = [8, 384], strides = [1, 1]} : vector<8x464xf32> to vector<8x384xf32>
    %23 = arith.addf %21, %22 : vector<8x384xf32>
    %cst_4 = arith.constant 0.233880758 : f32
    %24 = vector.broadcast %cst_4 : f32 to vector<8x384xf32>
    %25 = arith.mulf %24, %23 : vector<8x384xf32>
    %26 = arith.addf %20, %25 : vector<8x384xf32>
    %27 = vector.extract_strided_slice %15 {offsets = [0, 40], sizes = [8, 384], strides = [1, 1]} : vector<8x464xf32> to vector<8x384xf32>
    %cst_5 = arith.constant 0.292081714 : f32
    %28 = vector.broadcast %cst_5 : f32 to vector<8x384xf32>
    %29 = arith.mulf %28, %27 : vector<8x384xf32>
    %30 = arith.addf %26, %29 : vector<8x384xf32>
    %c0_6 = arith.constant 0 : index
    %c0_7 = arith.constant 0 : index
    %31 = vector.load %arg2[%c0_6, %c0_7] : memref<8x384xf32, #tpu.memory_space<vmem>>, vector<8x384xf32>
    tpu.vector_store %arg2[%c0_6, %c0_7], %30 {strides = array<i32>} : memref<8x384xf32, #tpu.memory_space<vmem>>, vector<8x384xf32>,
    return
  }
  func.func @transform_0(%arg0: i32) -> (i32, i32) {
    %c0_i32 = arith.constant 0 : i32
    %c0_i32_0 = arith.constant 0 : i32
    return %arg0, %c0_i32 : i32, i32
  }
  func.func @transform_1(%arg0: i32) -> (i32, i32) {
    %c0_i32 = arith.constant 0 : i32
    %c0_i32_0 = arith.constant 0 : i32
    return %arg0, %c0_i32 : i32, i32
  }
}

</mosaic_0001>

<bundles_post_ra>
// kernel: tpu_custom_call.1
= control target key start
LH: loop header
LB: loop body
LE: loop exit
PB: predicated region body
PF: predicated region fallthrough
CT: control target
= control target key end

     0   :  { %6 = vsyncpa [#allocation3], 0  ;;  %s365_s0 = inlined_call_operand.hbm [shape: f32[8,512], index: 0, kind: input, shape index: {}]   ;;  %s366_s1 = inlined_call_operand.hbm [shape: f32[8,384], index: 1, kind: output, shape index: {}]  }
   0x1   :  { %7 = vsyncpa [#allocation4], 0  ;;  %s13_s8 = sshll.u32 %s365_s0, 4  ;;  %s306_s9 = smov [#allocation2]   ;;  %s14_s8 = int_to_ptr.hbm [resolvable:$true] %s13_s8 }
   0x2   :  { %s15_s10 = sshll.u32 %s306_s9, 4  ;;  %s16_s10 = int_to_ptr.vmem [resolvable:$true] %s15_s10 }
   0x3   :  { %18 = dma.hbm_to_vmem [thread:$0]  %s14_s8, 512, %s16_s10, [#allocation3]  }
   0x4   :  { %302 = dma.done.wait [#allocation3], 512  }
   0x5   :  { %303 = vsyncadd [#allocation3], 4294966784  ;;  %v25_v0 = vld [vmem:[#allocation2 + $0x10] sm:$0xff]  ;;  %v23_v1 = vld [vmem:[#allocation2] sm:$0xff]  ;;  %s307_s11 = smov 126   ;;  %s308_s12 = smov 124  }
   0x6   :  { %59 = vrot.lane.b32.xlu1 %v25_v0, %s307_s11  ;;  %55 = vrot.lane.b32.xlu0 %v23_v1, %s307_s11  ;;  %v26_v2 = vld [vmem:[#allocation2 + $0x18] sm:$0xff]  ;;  %v24_v3 = vld [vmem:[#allocation2 + $0x8] sm:$0xff]  ;;  %v103_v4 = vmul.f32 0.2920817, %v23_v1  ;;  %vm63_vm0 = vcmask 1031168   ;;  %s309_s0 = smov 127  }
   0x7   :  { %31 = vrot.lane.b32.xlu2 %v23_v1, %s308_s12  ;;  %v104_v19 = vmul.f32 0.2920817, %v24_v3  ;;  %v106_v20 = vmul.f32 0.2920817, %v26_v2  ;;  %v105_v22 = vmul.f32 0.2920817, %v25_v0 }
   0x8   :  { %vm39_vm1 = vcmask 1014784   ;;  %vm91_vm2 = vcmask 1039360   ;;  %s310_s13 = smov 88   ;;  %s311_s14 = smov 48   ;;  %vm163_vm3 = vcmask 719872   ;;  %vm142_vm4 = vcmask 392192  }
   0x9   :  { %s312_s15 = smov 108   ;;  %vm191_vm5 = vcmask 883712   ;;  %s313_s16 = smov [#allocation5]  }
   0xa   :  { %s234_s17 = sshll.u32 %s313_s16, 4  ;;  %s236_s20 = sshll.u32 %s366_s1, 4  ;;  %s235_s17 = int_to_ptr.vmem [resolvable:$true] %s234_s17  ;;  %s237_s20 = int_to_ptr.hbm [resolvable:$true] %s236_s20 }
   0xe   :  { %61 = vrot.lane.b32.xlu1 %v26_v2, %s307_s11  ;;  %57 = vrot.lane.b32.xlu0 %v24_v3, %s307_s11 }
   0xf   :  { %33 = vrot.lane.b32.xlu2 %v24_v3, %s308_s12 }
  0x16   :  { %37 = vrot.lane.b32.xlu1 %v26_v2, %s308_s12  ;;  %35 = vrot.lane.b32.xlu0 %v25_v0, %s308_s12 }
  0x1e   :  { %111 = vrot.lane.b32.xlu0 %v103_v4, %s307_s11 }
  0x61   :  { %v32_v23 = vpop.permute.xlu2 %31 }
  0x69   :  { %v34_v24 = vpop.permute.xlu2 %33 }
  0x6a   :  { %v40_v30 = vsel %vm39_vm1, %v32_v23, %v34_v24 }
  0x6b   :  { %v47_v35 = vadd.f32 %v40_v30, %v23_v1 }
  0x6d   :  { %v51_v41 = vmul.f32 0.120078385, %v47_v35 }
  0x78   :  { %v60_v5 = vpop.permute.xlu1 %59  ;;  %v56_v6 = vpop.permute.xlu0 %55 }
  0x80   :  { %v62_v7 = vpop.permute.xlu1 %61  ;;  %v58_v8 = vpop.permute.xlu0 %57 }
  0x81   :  { %v66_v9 = vsel %vm63_vm0, %v60_v5, %v62_v7  ;;  %v74_v10 = vadd.f32 %v62_v7, %v26_v2  ;;  %v65_v11 = vsel %vm63_vm0, %v58_v8, %v60_v5  ;;  %v64_v16 = vsel %vm63_vm0, %v56_v6, %v58_v8 }
  0x82   :  { %v73_v12 = vadd.f32 %v66_v9, %v25_v0  ;;  %v72_v13 = vadd.f32 %v65_v11, %v24_v3  ;;  %v71_v18 = vadd.f32 %v64_v16, %v23_v1 }
  0x83   :  { %v78_v14 = vmul.f32 0.23388076, %v74_v10 }
  0x84   :  { %v77_v15 = vmul.f32 0.23388076, %v73_v12  ;;  %v76_v17 = vmul.f32 0.23388076, %v72_v13  ;;  %v75_v21 = vmul.f32 0.23388076, %v71_v18 }
  0x85   :  { %89 = vrot.lane.b32.xlu2 %v78_v14, %s309_s0 }
  0x86   :  { %87 = vrot.lane.b32.xlu1 %v77_v15, %s309_s0  ;;  %85 = vrot.lane.b32.xlu0 %v76_v17, %s309_s0 }
  0x88   :  { %v36_v25 = vpop.permute.xlu0 %35  ;;  %v38_v28 = vpop.permute.xlu1 %37 }
  0x89   :  { %v41_v31 = vsel %vm39_vm1, %v34_v24, %v36_v25  ;;  %v42_v32 = vsel %vm39_vm1, %v36_v25, %v38_v28  ;;  %v50_v45 = vadd.f32 %v38_v28, %v26_v2 }
  0x8a   :  { %v48_v36 = vadd.f32 %v41_v31, %v24_v3  ;;  %v49_v37 = vadd.f32 %v42_v32, %v25_v0 }
  0x8b   :  { %v54_v57 = vmul.f32 0.120078385, %v50_v45 }
  0x8c   :  { %v52_v42 = vmul.f32 0.120078385, %v48_v36  ;;  %v53_v43 = vmul.f32 0.120078385, %v49_v37 }
  0x8d   :  { %83 = vrot.lane.b32.xlu2 %v75_v21, %s309_s0 }
  0x8e   :  { %113 = vrot.lane.b32.xlu1 %v104_v19, %s307_s11  ;;  %117 = vrot.lane.b32.xlu0 %v106_v20, %s307_s11 }
  0x90   :  { %v112_v27 = vpop.permute.xlu0 %111 }
  0x95   :  { %115 = vrot.lane.b32.xlu2 %v105_v22, %s307_s11 }
  0xdf   :  { %v90_v26 = vpop.permute.xlu2 %89 }
  0xe0   :  { %v102_v58 = vadd.f32 %v90_v26, %v54_v57 }
  0xe7   :  { %v84_v29 = vpop.permute.xlu2 %83 }
  0xef   :  { %v116_v44 = vpop.permute.xlu2 %115 }
  0xf8   :  { %v88_v33 = vpop.permute.xlu1 %87  ;;  %v86_v34 = vpop.permute.xlu0 %85 }
  0xf9   :  { %v94_v38 = vsel %vm91_vm2, %v88_v33, %v90_v26  ;;  %v92_v39 = vsel %vm91_vm2, %v84_v29, %v86_v34  ;;  %v93_v40 = vsel %vm91_vm2, %v86_v34, %v88_v33 }
  0xfa   :  { %v101_v46 = vadd.f32 %v94_v38, %v53_v43  ;;  %v99_v47 = vadd.f32 %v92_v39, %v51_v41  ;;  %v100_v48 = vadd.f32 %v93_v40, %v52_v42 }
 0x100   :  { %v114_v49 = vpop.permute.xlu1 %113  ;;  %v118_v50 = vpop.permute.xlu0 %117 }
 0x101   :  { %v119_v51 = vsel %vm63_vm0, %v112_v27, %v114_v49  ;;  %v120_v52 = vsel %vm63_vm0, %v114_v49, %v116_v44  ;;  %v121_v53 = vsel %vm63_vm0, %v116_v44, %v118_v50  ;;  %v129_v59 = vadd.f32 %v118_v50, %v102_v58 }
 0x102   :  { %v126_v54 = vadd.f32 %v119_v51, %v99_v47  ;;  %v341_v55 = vadd.f32 %v120_v52, %v100_v48  ;;  %v128_v56 = vadd.f32 %v121_v53, %v101_v46 }
 0x103   :  { %v204_v10 = vmul.f32 0.2920817, %v129_v59 }
 0x104   :  { %157 = vrot.lane.b32.xlu2 %v341_v55, %s310_s13  ;;  %155 = vrot.lane.b32.xlu1 %v126_v54, %s310_s13  ;;  %v201_v60 = vmul.f32 0.2920817, %v126_v54  ;;  %v202_v13 = vmul.f32 0.2920817, %v341_v55  ;;  %v203_v14 = vmul.f32 0.2920817, %v128_v56 }
 0x105   :  { %159 = vrot.lane.b32.xlu0 %v128_v56, %s310_s13 }
 0x10c   :  { %140 = vrot.lane.b32.xlu2 %v129_v59, %s311_s14  ;;  %161 = vrot.lane.b32.xlu1 %v129_v59, %s310_s13 }
 0x10d   :  { %136 = vrot.lane.b32.xlu0 %v341_v55, %s311_s14 }
 0x114   :  { %134 = vrot.lane.b32.xlu2 %v126_v54, %s311_s14  ;;  %138 = vrot.lane.b32.xlu1 %v128_v56, %s311_s14 }
 0x11c   :  { %209 = vrot.lane.b32.xlu1 %v201_v60, %s310_s13 }
 0x15e   :  { %v158_v62 = vpop.permute.xlu2 %157 }
 0x166   :  { %v141_v15 = vpop.permute.xlu2 %140 }
 0x16e   :  { %v135_v17 = vpop.permute.xlu2 %134 }
 0x176   :  { %v156_v61 = vpop.permute.xlu1 %155 }
 0x177   :  { %v160_v63 = vpop.permute.xlu0 %159  ;;  %v164_v8 = vsel %vm163_vm3, %v156_v61, %v158_v62 }
 0x178   :  { %v165_v0 = vsel %vm163_vm3, %v158_v62, %v160_v63  ;;  %v171_v11 = vadd.f32 %v164_v8, %v126_v54 }
 0x179   :  { %v172_v1 = vadd.f32 %v165_v0, %v341_v55 }
 0x17a   :  { %v175_v12 = vmul.f32 0.23388076, %v171_v11 }
 0x17b   :  { %v176_v2 = vmul.f32 0.23388076, %v172_v1 }
 0x17d   :  { %185 = vrot.lane.b32.xlu1 %v176_v2, %s312_s15 }
 0x17e   :  { %v162_v3 = vpop.permute.xlu1 %161 }
 0x17f   :  { %v166_v4 = vsel %vm163_vm3, %v160_v63, %v162_v3  ;;  %v174_v5 = vadd.f32 %v162_v3, %v129_v59  ;;  %v137_v18 = vpop.permute.xlu0 %136 }
 0x180   :  { %v173_v6 = vadd.f32 %v166_v4, %v128_v56  ;;  %v143_v22 = vsel %vm142_vm4, %v135_v17, %v137_v18 }
 0x181   :  { %v178_v7 = vmul.f32 0.23388076, %v174_v5  ;;  %v149_v23 = vadd.f32 %v143_v22, %v126_v54 }
 0x182   :  { %v177_v9 = vmul.f32 0.23388076, %v173_v6 }
 0x183   :  { %189 = vrot.lane.b32.xlu0 %v178_v7, %s312_s15  ;;  %v152_v27 = vmul.f32 0.120078385, %v149_v23 }
 0x184   :  { %187 = vrot.lane.b32.xlu2 %v177_v9, %s312_s15 }
 0x185   :  { %215 = vrot.lane.b32.xlu1 %v204_v10, %s310_s13 }
 0x186   :  { %v139_v16 = vpop.permute.xlu1 %138 }
 0x187   :  { %v144_v25 = vsel %vm142_vm4, %v137_v18, %v139_v16  ;;  %v145_v26 = vsel %vm142_vm4, %v139_v16, %v141_v15 }
 0x188   :  { %v150_v31 = vadd.f32 %v144_v25, %v341_v55  ;;  %v151_v32 = vadd.f32 %v145_v26, %v128_v56 }
 0x18a   :  { %v153_v38 = vmul.f32 0.120078385, %v150_v31  ;;  %v154_v39 = vmul.f32 0.120078385, %v151_v32 }
 0x18b   :  { %183 = vrot.lane.b32.xlu0 %v175_v12, %s312_s15 }
 0x18c   :  { %211 = vrot.lane.b32.xlu2 %v202_v13, %s310_s13 }
 0x18e   :  { %v210_v19 = vpop.permute.xlu1 %209 }
 0x193   :  { %213 = vrot.lane.b32.xlu0 %v203_v14, %s310_s13 }
 0x1de   :  { %v188_v20 = vpop.permute.xlu2 %187 }
 0x1e6   :  { %v212_v28 = vpop.permute.xlu2 %211 }
 0x1e7   :  { %v217_v34 = vsel %vm163_vm3, %v210_v19, %v212_v28 }
 0x1ef   :  { %v186_v24 = vpop.permute.xlu1 %185 }
 0x1f0   :  { %v193_v36 = vsel %vm191_vm5, %v186_v24, %v188_v20 }
 0x1f1   :  { %v199_v40 = vadd.f32 %v193_v36, %v153_v38 }
 0x1f5   :  { %v190_v21 = vpop.permute.xlu0 %189 }
 0x1f6   :  { %v194_v37 = vsel %vm191_vm5, %v188_v20, %v190_v21 }
 0x1f7   :  { %v200_v41 = vadd.f32 %v194_v37, %v154_v39  ;;  %v216_v42 = vpop.permute.xlu1 %215 }
 0x1fd   :  { %v184_v29 = vpop.permute.xlu0 %183 }
 0x1fe   :  { %v192_v30 = vsel %vm191_vm5, %v184_v29, %v186_v24 }
 0x1ff   :  { %v198_v33 = vadd.f32 %v192_v30, %v152_v27 }
 0x201   :  { %v223_v35 = vadd.f32 %v217_v34, %v198_v33 }
 0x203   :  { %226 = vst [vmem:[#allocation5] sm:$0xff] %v223_v35 }
 0x205   :  { %v214_v43 = vpop.permute.xlu0 %213 }
 0x206   :  { %v218_v44 = vsel %vm163_vm3, %v212_v28, %v214_v43  ;;  %v219_v45 = vsel %vm163_vm3, %v214_v43, %v216_v42 }
 0x207   :  { %v224_v46 = vadd.f32 %v218_v44, %v199_v40  ;;  %v225_v47 = vadd.f32 %v219_v45, %v200_v41 }
 0x209   :  { %227 = vst [vmem:[#allocation5 + $0x8] sm:$0xff] %v224_v46 }
 0x20a   :  { %228 = vst [vmem:[#allocation5 + $0x10] sm:$0xff] %v225_v47 }
 0x20b   :  { %239 = dma.vmem_to_hbm [thread:$0]  %s235_s17, 384, %s237_s20, [#allocation4]  }
 0x20c   :  { %304 = dma.done.wait [#allocation4], 384  }
 0x20d   :  { %305 = vsyncadd [#allocation4], 4294966912 }
 0x20e   :  { %244 = vsyncpa [#allocation3], 1 }
 0x20f   :  { %245 = vsyncpa [#allocation4], 1 }

</bundles_post_ra>
